<compile_context>
chip_gen: v5e
topology: v5e:2x2
jax: 0.10.0
libtpu: 0.0.40
codegen_flags: <defaults>
</compile_context>

<pallas_src>
import functools

import jax
import jax.numpy as jnp
from jax import lax
from jax.experimental import pallas as pl
from jax.experimental.pallas import tpu as pltpu


# ----------------------------------------------------------------------------
# small helpers
# ----------------------------------------------------------------------------
def _cparams(sem):
    return pltpu.CompilerParams(dimension_semantics=sem,
                                vmem_limit_bytes=32 * 1024 * 1024)


def _pick_tile_rows(H, W, cin, cout, *, upsample=False, budget=8 << 20):
    """Largest divisor of H whose per-tile working set fits the VMEM budget."""
    best = 1
    for th in range(1, H + 1):
        if H % th:
            continue
        mul = 4 if upsample else 1            # upsampled tile has 4x pixels
        pix = th * W * mul
        est = 4 * (2 * th * W * cin           # double-buffered input tiles
                   + 2 * pix * cout           # double-buffered output tile
                   + pix * 9 * cin            # f32 im2col patch
                   + 2 * pix * cin)           # activated / expanded temporaries
        if est <= budget:
            best = th
    return best


def _repeat2(x, axis):
    """Nearest-neighbour 2x duplication along `axis` via broadcast+reshape."""
    e = jnp.expand_dims(x, axis + 1)
    t = jnp.broadcast_to(e, e.shape[:axis + 1] + (2,) + e.shape[axis + 2:])
    return t.reshape(x.shape[:axis] + (2 * x.shape[axis],) + x.shape[axis + 1:])


# ----------------------------------------------------------------------------
# Kernels
# ----------------------------------------------------------------------------
def _gn_stats_kernel(x_ref, sum_ref, sq_ref):
    """Per-(batch, row-tile) channel sums / sums-of-squares (f32)."""
    x = x_ref[0].astype(jnp.float32)                  # (TH, W, C)
    xf = x.reshape(-1, x.shape[-1])                   # (TH*W, C)
    sum_ref[0, 0] = jnp.sum(xf, axis=0, keepdims=True)
    sq_ref[0, 0] = jnp.sum(xf * xf, axis=0, keepdims=True)


def _norm_act_conv(xc_ref, xt_ref, xb_ref, sc_ref, sh_ref, w_ref, b_ref,
                   *, th, w_dim, n_rt):
    """Fused (GN-affine + SiLU) prologue + 3x3 conv (im2col single matmul).

    Returns f32 (TH*W, Cout) = conv(silu(x*scale + shift)) + bias.
    Halo rows come from neighbor 1-row blocks; they are zeroed post-activation
    at the image borders (matching the conv's zero padding).
    """
    r = pl.program_id(1)
    scale = sc_ref[0]                                  # (1, Cin)
    shift = sh_ref[0]

    def act(v):                                        # GN affine + SiLU in f32
        y = v.astype(jnp.float32) * scale + shift
        return y * jax.nn.sigmoid(y)

    top_keep = (r > 0).astype(jnp.float32)
    bot_keep = (r < n_rt - 1).astype(jnp.float32)
    a_t = act(xt_ref[0]) * top_keep                    # (1,  W, Cin)
    a_c = act(xc_ref[0])                               # (TH, W, Cin)
    a_b = act(xb_ref[0]) * bot_keep                    # (1,  W, Cin)
    a = jnp.concatenate([a_t, a_c, a_b], axis=0)       # (TH+2, W, Cin)

    cin = a.shape[-1]
    zcol = jnp.zeros((th + 2, 1, cin), jnp.float32)
    xa = jnp.concatenate([zcol, a, zcol], axis=1)      # (TH+2, W+2, Cin)

    cols = [xa[dy:dy + th, dx:dx + w_dim, :] for dy in range(3) for dx in range(3)]
    patch = jnp.concatenate(cols, axis=-1)             # (TH, W, 9*Cin)
    patch = patch.reshape(th * w_dim, 9 * cin).astype(jnp.bfloat16)

    acc = jnp.dot(patch, w_ref[...], preferred_element_type=jnp.float32)
    return acc + b_ref[...]


def _gn_silu_conv3x3_kernel(xc_ref, xt_ref, xb_ref, sc_ref, sh_ref, w_ref, b_ref,
                            o_ref, *, th, w_dim, n_rt):
    conv = _norm_act_conv(xc_ref, xt_ref, xb_ref, sc_ref, sh_ref, w_ref, b_ref,
                          th=th, w_dim=w_dim, n_rt=n_rt)
    o_ref[0] = conv.astype(o_ref.dtype)


def _gn_silu_conv3x3_res_kernel(xc_ref, xt_ref, xb_ref, sc_ref, sh_ref, w_ref,
                                b_ref, res_ref, scw_ref, scb_ref, o_ref,
                                *, th, w_dim, n_rt, out_scale, conv_shortcut):
    """conv2 + fused resnet epilogue: out = (conv + shortcut(x)) * (1/osf)."""
    conv = _norm_act_conv(xc_ref, xt_ref, xb_ref, sc_ref, sh_ref, w_ref, b_ref,
                          th=th, w_dim=w_dim, n_rt=n_rt)
    res = res_ref[0].astype(jnp.float32).reshape(th * w_dim, -1)
    if conv_shortcut:
        res = jnp.dot(res.astype(jnp.bfloat16), scw_ref[...],
                      preferred_element_type=jnp.float32) + scb_ref[...]
    o_ref[0] = ((conv + res) * out_scale).astype(o_ref.dtype)


def _upsample2x_conv3x3_kernel(xc_ref, xt_ref, xb_ref, w_ref, b_ref, o_ref,
                               *, th, w_dim, n_rt):
    """Nearest-2x upsample (in VMEM) fused with the 3x3 conv of Upsample2D."""
    r = pl.program_id(1)
    xc = xc_ref[0].astype(jnp.float32)                            # (TH, W, C)
    xt = xt_ref[0].astype(jnp.float32) * (r > 0).astype(jnp.float32)
    xb = xb_ref[0].astype(jnp.float32) * (r < n_rt - 1).astype(jnp.float32)

    up_c = _repeat2(xc, 0)                                        # (2TH, W, C)
    rows = jnp.concatenate([xt, up_c, xb], axis=0)                # (2TH+2, W, C)
    up = _repeat2(rows, 1)                                        # (2TH+2, 2W, C)

    c = up.shape[-1]
    h2, w2 = 2 * th, 2 * w_dim
    zcol = jnp.zeros((h2 + 2, 1, c), jnp.float32)
    xa = jnp.concatenate([zcol, up, zcol], axis=1)                # (2TH+2, 2W+2, C)

    cols = [xa[dy:dy + h2, dx:dx + w2, :] for dy in range(3) for dx in range(3)]
    patch = jnp.concatenate(cols, axis=-1).reshape(h2 * w2, 9 * c)
    patch = patch.astype(jnp.bfloat16)

    acc = jnp.dot(patch, w_ref[...], preferred_element_type=jnp.float32)
    o_ref[0] = (acc + b_ref[...]).astype(o_ref.dtype)


# ----------------------------------------------------------------------------
# Pallas wrappers
# ----------------------------------------------------------------------------
def _gn_scale_shift(x_nhwc, gamma, beta, groups, eps, th):
    """GroupNorm stats (Pallas) folded into per-(batch, channel) affine."""
    B, H, W, C = x_nhwc.shape
    n_rt = H // th
    sums, sqs = pl.pallas_call(
        _gn_stats_kernel,
        out_shape=(jax.ShapeDtypeStruct((B, n_rt, 1, C), jnp.float32),
                   jax.ShapeDtypeStruct((B, n_rt, 1, C), jnp.float32)),
        grid=(B, n_rt),
        in_specs=[pl.BlockSpec((1, th, W, C), lambda b, r: (b, r, 0, 0))],
        out_specs=(pl.BlockSpec((1, 1, 1, C), lambda b, r: (b, r, 0, 0)),
                   pl.BlockSpec((1, 1, 1, C), lambda b, r: (b, r, 0, 0))),
        compiler_params=_cparams(("parallel", "parallel")),
    )(x_nhwc)

    # Tiny O(B*C) fold in plain JAX: group-reduce, mean/rstd, affine.
    s = jnp.sum(sums, axis=(1, 2))                    # (B, C)
    ss = jnp.sum(sqs, axis=(1, 2))
    cg = C // groups
    n = H * W * cg
    gs = s.reshape(B, groups, cg).sum(-1)             # (B, G)
    gss = ss.reshape(B, groups, cg).sum(-1)
    mean = gs / n
    var = gss / n - mean * mean
    rstd = lax.rsqrt(var + eps)
    mean_c = jnp.repeat(mean, cg, axis=1)             # (B, C)
    rstd_c = jnp.repeat(rstd, cg, axis=1)
    scale = rstd_c * gamma[None, :]
    shift = beta[None, :] - mean_c * scale
    return scale.reshape(B, 1, C), shift.reshape(B, 1, C)


def _fused_norm_act_conv3x3(x_nhwc, scale_bc, shift_bc, w_hwio, bias, th,
                            residual=None, sc_w=None, sc_b=None, out_scale=1.0):
    B, H, W, Cin = x_nhwc.shape
    Cout = w_hwio.shape[-1]
    n_rt = H // th
    w9 = w_hwio.reshape(9 * Cin, Cout).astype(jnp.bfloat16)
    b2 = bias.reshape(1, Cout).astype(jnp.float32)

    center = pl.BlockSpec((1, th, W, Cin), lambda b, r: (b, r, 0, 0))
    top = pl.BlockSpec((1, 1, W, Cin),
                       lambda b, r: (b, jnp.maximum(r * th - 1, 0), 0, 0))
    bot = pl.BlockSpec((1, 1, W, Cin),
                       lambda b, r: (b, jnp.minimum(r * th + th, H - 1), 0, 0))
    vec = pl.BlockSpec((1, 1, Cin), lambda b, r: (b, 0, 0))
    wsp = pl.BlockSpec((9 * Cin, Cout), lambda b, r: (0, 0))
    bsp = pl.BlockSpec((1, Cout), lambda b, r: (0, 0))

    in_specs = [center, top, bot, vec, vec, wsp, bsp]
    args = [x_nhwc, x_nhwc, x_nhwc, scale_bc, shift_bc, w9, b2]

    if residual is None:
        kernel = functools.partial(_gn_silu_conv3x3_kernel, th=th, w_dim=W,
                                   n_rt=n_rt)
    else:
        Cr = residual.shape[-1]
        conv_shortcut = sc_w is not None
        if not conv_shortcut:                 # identity skip (Cin == Cout)
            sc_w = jnp.eye(Cr, Cout, dtype=jnp.float32)
            sc_b = jnp.zeros((Cout,), jnp.float32)
        in_specs += [pl.BlockSpec((1, th, W, Cr), lambda b, r: (b, r, 0, 0)),
                     pl.BlockSpec((Cr, Cout), lambda b, r: (0, 0)),
                     pl.BlockSpec((1, Cout), lambda b, r: (0, 0))]
        args += [residual, sc_w.astype(jnp.bfloat16),
                 sc_b.reshape(1, Cout).astype(jnp.float32)]
        kernel = functools.partial(_gn_silu_conv3x3_res_kernel, th=th, w_dim=W,
                                   n_rt=n_rt, out_scale=float(out_scale),
                                   conv_shortcut=conv_shortcut)

    out = pl.pallas_call(
        kernel,
        out_shape=jax.ShapeDtypeStruct((B, H * W, Cout), x_nhwc.dtype),
        grid=(B, n_rt),
        in_specs=in_specs,
        out_specs=pl.BlockSpec((1, th * W, Cout), lambda b, r: (b, r, 0)),
        compiler_params=_cparams(("parallel", "parallel")),
    )(*args)
    return out.reshape(B, H, W, Cout)


def _fused_upsample2x_conv3x3(x_nhwc, w_hwio, bias, th):
    B, H, W, C = x_nhwc.shape
    Cout = w_hwio.shape[-1]
    n_rt = H // th
    w9 = w_hwio.reshape(9 * C, Cout).astype(jnp.bfloat16)
    b2 = bias.reshape(1, Cout).astype(jnp.float32)

    out = pl.pallas_call(
        functools.partial(_upsample2x_conv3x3_kernel, th=th, w_dim=W, n_rt=n_rt),
        out_shape=jax.ShapeDtypeStruct((B, 4 * H * W, Cout), x_nhwc.dtype),
        grid=(B, n_rt),
        in_specs=[
            pl.BlockSpec((1, th, W, C), lambda b, r: (b, r, 0, 0)),
            pl.BlockSpec((1, 1, W, C),
                         lambda b, r: (b, jnp.maximum(r * th - 1, 0), 0, 0)),
            pl.BlockSpec((1, 1, W, C),
                         lambda b, r: (b, jnp.minimum(r * th + th, H - 1), 0, 0)),
            pl.BlockSpec((9 * C, Cout), lambda b, r: (0, 0)),
            pl.BlockSpec((1, Cout), lambda b, r: (0, 0)),
        ],
        out_specs=pl.BlockSpec((1, 4 * th * W, Cout), lambda b, r: (b, r, 0)),
        compiler_params=_cparams(("parallel", "parallel")),
    )(x_nhwc, x_nhwc, x_nhwc, w9, b2)
    return out.reshape(B, 2 * H, 2 * W, Cout)


# ----------------------------------------------------------------------------
# UpDecoderBlock3D forward (num_layers=1, temb=None, num_frames=1)
# ----------------------------------------------------------------------------
def up_decoder_block3d_forward(x_nchw, params, *, groups, eps, osf,
                               num_frames=1, row_tile=None):
    if num_frames > 1:
        # TODO(synk): TemporalConvBlock (num_frames>1 path) is not defined in the
        # reference module source; only the num_frames==1 path is implemented.
        raise NotImplementedError("num_frames > 1 not implemented")

    x = jnp.transpose(x_nchw, (0, 2, 3, 1))          # NCHW -> NHWC
    B, H, W, Cin = x.shape
    Cout = params["conv1_w"].shape[-1]
    if row_tile is not None:
        assert H % row_tile == 0, "row_tile must divide H"

    # --- ResnetBlock2D (pre_norm, temb=None, dropout=0 -> identity) ---------
    th1 = row_tile or _pick_tile_rows(H, W, Cin, Cout)
    s1, b1 = _gn_scale_shift(x, params["norm1_g"], params["norm1_b"],
                             groups, eps, th1)
    h = _fused_norm_act_conv3x3(x, s1, b1, params["conv1_w"], params["conv1_b"],
                                th1)

    th2 = row_tile or _pick_tile_rows(H, W, Cout, Cout)
    s2, b2 = _gn_scale_shift(h, params["norm2_g"], params["norm2_b"],
                             groups, eps, th2)
    h = _fused_norm_act_conv3x3(h, s2, b2, params["conv2_w"], params["conv2_b"],
                                th2, residual=x,
                                sc_w=params.get("shortcut_w"),
                                sc_b=params.get("shortcut_b"),
                                out_scale=1.0 / osf)

    # --- Upsample2D(use_conv=True): nearest-2x fused into 3x3 conv ----------
    th3 = row_tile or _pick_tile_rows(H, W, Cout, params["up_w"].shape[-1],
                                      upsample=True)
    y = _fused_upsample2x_conv3x3(h, params["up_w"], params["up_b"], th3)

    return jnp.transpose(y, (0, 3, 1, 2))            # NHWC -> NCHW


# ----------------------------------------------------------------------------
# Pure-JAX reference (matching bf16-at-MXU, f32-accumulate numerics)
# ----------------------------------------------------------------------------
def _ref_gn(x, gamma, beta, groups, eps):
    B, H, W, C = x.shape
    xg = x.reshape(B, H, W, groups, C // groups)
    mean = jnp.mean(xg, axis=(1, 2, 4), keepdims=True)
    var = jnp.mean((xg - mean) ** 2, axis=(1, 2, 4), keepdims=True)
    xn = ((xg - mean) / jnp.sqrt(var + eps)).reshape(B, H, W, C)
    return xn * gamma + beta


def _ref_conv3x3(x, w, b):
    y = lax.conv_general_dilated(x.astype(jnp.bfloat16), w.astype(jnp.bfloat16),
                                 (1, 1), "SAME",
                                 dimension_numbers=("NHWC", "HWIO", "NHWC"),
                                 preferred_element_type=jnp.float32)
    return y + b


def ref_forward(x_nchw, p, *, groups, eps, osf):
    x = jnp.transpose(x_nchw, (0, 2, 3, 1))
    h = jax.nn.silu(_ref_gn(x, p["norm1_g"], p["norm1_b"], groups, eps))
    h = _ref_conv3x3(h, p["conv1_w"], p["conv1_b"])
    h = jax.nn.silu(_ref_gn(h, p["norm2_g"], p["norm2_b"], groups, eps))
    h = _ref_conv3x3(h, p["conv2_w"], p["conv2_b"])
    sc = jnp.einsum("bhwc,cd->bhwd", x.astype(jnp.bfloat16),
                    p["shortcut_w"].astype(jnp.bfloat16),
                    preferred_element_type=jnp.float32) + p["shortcut_b"]
    x = (sc + h) / osf
    x = jnp.repeat(jnp.repeat(x, 2, axis=1), 2, axis=2)
    x = _ref_conv3x3(x, p["up_w"], p["up_b"])
    return jnp.transpose(x, (0, 3, 1, 2))


# ----------------------------------------------------------------------------
if __name__ == "__main__":
    # Small config: in_channels=8, out_channels=16, resnet_groups=4
    B, IN_C, OUT_C, H, W = 2, 8, 16, 16, 16
    GROUPS, EPS, OSF = 4, 1e-6, 1.0

    key = jax.random.PRNGKey(0)
    ks = jax.random.split(key, 16)
    f32 = jnp.float32

    x = jax.random.normal(ks[0], (B, IN_C, H, W), f32)

    params = {
        "norm1_g": 1.0 + 0.1 * jax.random.normal(ks[1], (IN_C,), f32),
        "norm1_b": 0.1 * jax.random.normal(ks[2], (IN_C,), f32),
        "conv1_w": 0.2 * jax.random.normal(ks[3], (3, 3, IN_C, OUT_C), f32),
        "conv1_b": 0.1 * jax.random.normal(ks[4], (OUT_C,), f32),
        "norm2_g": 1.0 + 0.1 * jax.random.normal(ks[5], (OUT_C,), f32),
        "norm2_b": 0.1 * jax.random.normal(ks[6], (OUT_C,), f32),
        "conv2_w": 0.2 * jax.random.normal(ks[7], (3, 3, OUT_C, OUT_C), f32),
        "conv2_b": 0.1 * jax.random.normal(ks[8], (OUT_C,), f32),
        "shortcut_w": 0.3 * jax.random.normal(ks[9], (IN_C, OUT_C), f32),
        "shortcut_b": 0.1 * jax.random.normal(ks[10], (OUT_C,), f32),
        "up_w": 0.2 * jax.random.normal(ks[11], (3, 3, OUT_C, OUT_C), f32),
        "up_b": 0.1 * jax.random.normal(ks[12], (OUT_C,), f32),
    }

    ref = jax.block_until_ready(
        ref_forward(x, params, groups=GROUPS, eps=EPS, osf=OSF))

    # Run both the explicitly row-tiled path (exercises halo exchange across
    # tiles) and the auto-tiled path (whole image per tile at this small size).
    for rt in (8, None):
        out = up_decoder_block3d_forward(x, params, groups=GROUPS, eps=EPS,
                                         osf=OSF, row_tile=rt)
        out = jax.block_until_ready(out)
        assert out.shape == (B, OUT_C, 2 * H, 2 * W), out.shape
        max_err = float(jnp.max(jnp.abs(out - ref)))
        assert max_err < 1e-2, f"row_tile={rt}: max abs error {max_err}"

    print("KERNEL_OK")
</pallas_src>

<mosaic_0001>
module attributes {stable_mosaic.version = 11 : i64} {
  func.func @_gn_stats_kernel(%arg0: i32, %arg1: i32, %arg2: memref<1x8x16x8xf32, #tpu.memory_space<vmem>>, %arg3: memref<1x1x1x8xf32, #tpu.memory_space<vmem>>, %arg4: memref<1x1x1x8xf32, #tpu.memory_space<vmem>>) attributes {dimension_semantics = [#tpu.dimension_semantics<parallel>, #tpu.dimension_semantics<parallel>], iteration_bounds = array<i64: 2, 2>, scalar_prefetch = 0 : i64, scratch_operands = 0 : i64, tpu.core_type = #tpu.core_type<tc>, window_params = [{transform_indices = @transform_0, window_bounds = array<i64: 1, 8, 16, 8>}, {transform_indices = @transform_1, window_bounds = array<i64: 1, 1, 1, 8>}, {transform_indices = @transform_2, window_bounds = array<i64: 1, 1, 1, 8>}]} {
    %c0 = arith.constant 0 : index
    %c0_0 = arith.constant 0 : index
    %c0_1 = arith.constant 0 : index
    %c0_2 = arith.constant 0 : index
    %0 = vector.load %arg2[%c0, %c0_0, %c0_1, %c0_2] : memref<1x8x16x8xf32, #tpu.memory_space<vmem>>, vector<1x8x16x8xf32>
    %1 = vector.shape_cast %0 : vector<1x8x16x8xf32> to vector<8x16x8xf32>
    %2 = vector.shape_cast %1 : vector<8x16x8xf32> to vector<128x8xf32>
    %cst = arith.constant dense<0.000000e+00> : vector<8xf32>
    %3 = vector.multi_reduction <add>, %2, %cst [0] : vector<128x8xf32> to vector<8xf32>
    %4 = vector.shape_cast %3 : vector<8xf32> to vector<1x8xf32>
    %c0_3 = arith.constant 0 : index
    %c0_4 = arith.constant 0 : index
    %c0_5 = arith.constant 0 : index
    %c0_6 = arith.constant 0 : index
    %5 = vector.load %arg3[%c0_3, %c0_4, %c0_5, %c0_6] : memref<1x1x1x8xf32, #tpu.memory_space<vmem>>, vector<1x1x1x8xf32>
    %6 = vector.shape_cast %5 : vector<1x1x1x8xf32> to vector<1x8xf32>
    %7 = vector.shape_cast %4 : vector<1x8xf32> to vector<1x1x1x8xf32>
    tpu.vector_store %arg3[%c0_3, %c0_4, %c0_5, %c0_6], %7 {strides = array<i32>} : memref<1x1x1x8xf32, #tpu.memory_space<vmem>>, vector<1x1x1x8xf32>,
    %8 = arith.mulf %2, %2 : vector<128x8xf32>
    %cst_7 = arith.constant dense<0.000000e+00> : vector<8xf32>
    %9 = vector.multi_reduction <add>, %8, %cst_7 [0] : vector<128x8xf32> to vector<8xf32>
    %10 = vector.shape_cast %9 : vector<8xf32> to vector<1x8xf32>
    %c0_8 = arith.constant 0 : index
    %c0_9 = arith.constant 0 : index
    %c0_10 = arith.constant 0 : index
    %c0_11 = arith.constant 0 : index
    %11 = vector.load %arg4[%c0_8, %c0_9, %c0_10, %c0_11] : memref<1x1x1x8xf32, #tpu.memory_space<vmem>>, vector<1x1x1x8xf32>
    %12 = vector.shape_cast %11 : vector<1x1x1x8xf32> to vector<1x8xf32>
    %13 = vector.shape_cast %10 : vector<1x8xf32> to vector<1x1x1x8xf32>
    tpu.vector_store %arg4[%c0_8, %c0_9, %c0_10, %c0_11], %13 {strides = array<i32>} : memref<1x1x1x8xf32, #tpu.memory_space<vmem>>, vector<1x1x1x8xf32>,
    return
  }
  func.func @transform_0(%arg0: i32, %arg1: i32) -> (i32, i32, i32, i32) {
    %c0_i32 = arith.constant 0 : i32
    %c0_i32_0 = arith.constant 0 : i32
    %c0_i32_1 = arith.constant 0 : i32
    return %arg0, %arg1, %c0_i32, %c0_i32_0 : i32, i32, i32, i32
  }
  func.func @transform_1(%arg0: i32, %arg1: i32) -> (i32, i32, i32, i32) {
    %c0_i32 = arith.constant 0 : i32
    %c0_i32_0 = arith.constant 0 : i32
    %c0_i32_1 = arith.constant 0 : i32
    return %arg0, %arg1, %c0_i32, %c0_i32_0 : i32, i32, i32, i32
  }
  func.func @transform_2(%arg0: i32, %arg1: i32) -> (i32, i32, i32, i32) {
    %c0_i32 = arith.constant 0 : i32
    %c0_i32_0 = arith.constant 0 : i32
    %c0_i32_1 = arith.constant 0 : i32
    return %arg0, %arg1, %c0_i32, %c0_i32_0 : i32, i32, i32, i32
  }
}

</mosaic_0001>

<bundles_post_ra>
// kernel: tpu_custom_call.1
= control target key start
LH: loop header
LB: loop body
LE: loop exit
PB: predicated region body
PF: predicated region fallthrough
CT: control target
= control target key end

     0   :  { %8 = vsyncpa [#allocation3], 0  ;;  %s865_s0 = inlined_call_operand.vmem [shape: f32[2,16,16,8], index: 0, kind: input, shape index: {}]   ;;  %s866_s1 = inlined_call_operand.hbm [shape: f32[2,2,1,8], index: 1, kind: output, shape index: {0}]   ;;  %s867_s2 = inlined_call_operand.hbm [shape: f32[2,2,1,8], index: 2, kind: output, shape index: {1}]  }
   0x1   :  { %10 = vsyncpa [#allocation3 + $0x1], 0 }
   0x2   :  { %11 = vsyncpa [#allocation5], 0 }
   0x3   :  { %13 = vsyncpa [#allocation5 + $0x1], 0  ;;  %s669_s9 = smov 0   ;;  %s671_s10 = smov 0  }
   0x4   :  { %s673_s11 = smov 0   ;;  %s675_s12 = smov 0  }
   0x5   :  { %s677_s13 = smov 0   ;;  %s679_s14 = smov 0  }
   0x6   :  { %s681_s15 = smov 0   ;;  %s683_s16 = smov 0  }
   0x7 LB: > { %s437_s17 = sadd.s32 4294967295, %s652_s16   ;;  %s438_s18 = sadd.s32 4294967294, %s652_s16   ;;  %s652_s16 = sphi %s683_s16, %s19_s16   ;;  %s648_s15 = sphi %s681_s15, %s876_s15   ;;  %s644_s14 = sphi %s679_s14, %s875_s14   ;;  %s640_s13 = sphi %s677_s13, %s874_s13   ;;  %s636_s12 = sphi %s675_s12, %s873_s12   ;;  %s632_s11 = sphi %s673_s11, %s872_s11   ;;  %s628_s10 = sphi %s671_s10, %s871_s10   ;;  %s624_s9 = sphi %s669_s9, %s870_s9  }
   0x8   : > { %s28_s19 = sadd.s32 1, %s644_s14  ;;  %s31_s20 = sadd.s32 1, %s648_s15 }
   0x9   : > { %p29_p0 = scmp.ge.s32.totalorder %s28_s19, 2  ;;  %p78_p1 = scmp.ne.s32.totalorder %s632_s11, %s628_s10 }
   0xa   : > { %p79_p2 = scmp.eq.s32.totalorder %s437_s17, 3  ;;  %p84_p5 = scmp.ne.s32.totalorder %s628_s10, %s624_s9 }
   0xb   : > { %s878_s19 = smov (%p29_p0, %s28_s19), 0  ;;  %s880_s20 = smov (!%p29_p0, %s31_s20), %s648_s15 }
   0xc   : > { %s64_s21 = ssub.s32 %s644_s14, %s878_s19  ;;  %p720_p3 = por %p79_p2, %p78_p1 }
   0xd   : > { %p33_p4 = scmp.ge.s32.totalorder %s880_s20, 2  ;;  %p85_p6 = scmp.eq.s32.totalorder %s438_s18, 3 }
   0xe   : > { %p441_p7 = scmp.ge.s32.totalorder %s652_s16, 1  ;;  %p145_p9 = scmp.lt.s32.totalorder %s652_s16, 5 }
   0xf   : > { %s882_s20 = smov (%p33_p4, %s880_s20), 0  ;;  %p729_p8 = por %p85_p6, %p84_p5 }
  0x10   : > { %s63_s24 = ssub.s32 %s648_s15, %s882_s20  ;;  %s68_s25 = sadd.s32 1, %s632_s11 }
  0x11   : > { %s65_s26 = sor.u32 %s64_s21, %s63_s24  ;;  %p146_p10 = pnand %p441_p7, %p145_p9 }
  0x12   : > { %p66_p11 = scmp.eq.s32.totalorder %s65_s26, 0  ;;  %s442_s28 = sshll.u32 (!%p146_p10), %s636_s12, 3 }
  0x13   : > { %149 = sbr.rel (%p146_p10) target bundleno = 91 (0x5b), region = 24  ;;  %p176_p12 = scmp.lt.s32.totalorder (!%p146_p10), %s640_s13, 1 }
  0x14   : > { %s738_s27 = scalar_select %p66_p11, %s632_s11, %s68_s25  }
  0x15   : > { %p178_p13 = scmp.lt.s32.totalorder (!%p146_p10), %s442_s28, 15  ;;  %s446_s17 = sshll.u32 (!%p146_p10), %s640_s13, 1 }
  0x16   : > { %s795_s18 = sand.u32 (!%p146_p10), 1, %s628_s10   ;;  %s799_s21 = sadd.s32 (!%p146_p10), %s636_s12, %s446_s17 }
  0x17   : > { %s311_s25 = scalar_lea.hbm (!%p146_p10), %s866_s1, %s799_s21  ;;  %s168_s26 = scalar_lea.vmem (!%p146_p10), [#allocation2], %s795_s18 }
  0x18   : > { %s177_s29 = scalar_select %p176_p12, %s640_s13, 1  ;;  %vm202_vm0 = vcmask 64512   ;;  %vm240_vm1 = vcmask 57344  }
  0x19   : > { %s884_s28 = smov (!%p178_p13, %s442_s28), 15  ;;  %s315_s12 = sshll.u32 %s311_s25, 4  ;;  %s316_s12 = int_to_ptr.hbm [resolvable:$true] %s315_s12 }
  0x1a   : > { %s444_s30 = sshll.u32 %s177_s29, 5  ;;  %s443_s3 = sshll.u32 %s884_s28, 1 }
  0x1b   : > { %s182_s4 = sadd.s32 %s444_s30, %s443_s3  ;;  %s313_s28 = sshll.u32 %s168_s26, 4  ;;  %s314_s28 = int_to_ptr.vmem [resolvable:$true] %s313_s28 }
  0x1c   : > { %s445_s5 = sshll.u32 %s182_s4, 3  ;;  %s326_s3 = scalar_lea.hbm %s867_s2, %s799_s21 }
  0x1d   : > { %s746_s8 = scalar_lea.vmem %s865_s0, %s445_s5  ;;  %s297_s4 = scalar_lea.sflag [#allocation3], %s795_s18 }
  0x1e   : > { %v186_v0 = vld [vmem:[%s746_s8] sm:$0xff]  ;;  %v187_v1 = vld [vmem:[%s746_s8 + $0x8] sm:$0xff]  ;;  %v188_v2 = vld [vmem:[%s746_s8 + $0x10] sm:$0xff]  ;;  %s540_s5 = sshra.s32 %s316_s12, 4  ;;  %s546_s17 = scalar_lea.hbm %s866_s1, 4  ;;  %s541_s5 = int_to_ptr.hbm [resolvable:$true] %s540_s5 }
  0x1f   : > { %v203_v3 = vsel %vm202_vm0, %v186_v0, 0.0  ;;  %v204_v4 = vsel %vm202_vm0, %v187_v1, 0.0  ;;  %v206_v5 = vsel %vm202_vm0, %v188_v2, 0.0  ;;  %v189_v6 = vld [vmem:[%s746_s8 + $0x18] sm:$0xff]  ;;  %v190_v9 = vld [vmem:[%s746_s8 + $0x20] sm:$0xff]  ;;  %v191_v12 = vld [vmem:[%s746_s8 + $0x28] sm:$0xff]  ;;  %v242_v14 = vmul.f32 %v186_v0, %v186_v0  ;;  %p547_p4 = scmp.lt.s32.totalorder %s541_s5, %s866_s1 }
  0x20   : > { %v205_v7 = vadd.f32 %v204_v4, %v203_v3  ;;  %v208_v8 = vsel %vm202_vm0, %v189_v6, 0.0  ;;  %v210_v11 = vsel %vm202_vm0, %v190_v9, 0.0  ;;  %v243_v15 = vmul.f32 %v187_v1, %v187_v1  ;;  %v192_v18 = vld [vmem:[%s746_s8 + $0x30] sm:$0xff]  ;;  %v193_v22 = vld [vmem:[%s746_s8 + $0x38] sm:$0xff]  ;;  %v194_v30 = vld [vmem:[%s746_s8 + $0x40] sm:$0xff]  ;;  %s542_s6 = scalar_lea.hbm %s541_s5, 1 }
  0x21   : > { %v212_v16 = vsel %vm202_vm0, %v191_v12, 0.0  ;;  %v244_v17 = vmul.f32 %v188_v2, %v188_v2  ;;  %v245_v20 = vmul.f32 %v189_v6, %v189_v6  ;;  %v214_v21 = vsel %vm202_vm0, %v192_v18, 0.0  ;;  %v195_v36 = vld [vmem:[%s746_s8 + $0x48] sm:$0xff]  ;;  %v196_v42 = vld [vmem:[%s746_s8 + $0x50] sm:$0xff]  ;;  %v197_v48 = vld [vmem:[%s746_s8 + $0x58] sm:$0xff]  ;;  %p543_p0 = scmp.ne.s32.totalorder %s541_s5, %s542_s6  ;;  %p548_p5 = scmp.lt.s32.totalorder %s546_s17, %s542_s6 }
  0x22   : > { %v207_v10 = vadd.f32 %v206_v5, %v205_v7  ;;  %v246_v24 = vmul.f32 %v190_v9, %v190_v9  ;;  %v258_v25 = vsel %vm202_vm0, %v242_v14, 0.0  ;;  %v259_v26 = vsel %vm202_vm0, %v243_v15, 0.0  ;;  %v198_v54 = vld [vmem:[%s746_s8 + $0x60] sm:$0xff]  ;;  %v199_v60 = vld [vmem:[%s746_s8 + $0x68] sm:$0xff]  ;;  %v200_v2 = vld [vmem:[%s746_s8 + $0x70] sm:$0xff] }
  0x23   : > { %v216_v27 = vsel %vm202_vm0, %v193_v22, 0.0  ;;  %v260_v28 = vadd.f32 %v259_v26, %v258_v25  ;;  %v261_v29 = vsel %vm202_vm0, %v244_v17, 0.0  ;;  %v247_v32 = vmul.f32 %v191_v12, %v191_v12  ;;  %p544_p1 = pnand %p543_p0, %p720_p3  ;;  %p549_p6 = por %p548_p5, %p547_p4 }
  0x24   : > { %v209_v13 = vadd.f32 %v208_v8, %v207_v10  ;;  %v263_v33 = vsel %vm202_vm0, %v245_v20, 0.0  ;;  %v218_v34 = vsel %vm202_vm0, %v194_v30, 0.0  ;;  %v248_v38 = vmul.f32 %v192_v18, %v192_v18  ;;  %v201_v8 = vld [vmem:[%s746_s8 + $0x78] sm:$0xff] }
  0x25   : > { %v262_v35 = vadd.f32 %v261_v29, %v260_v28  ;;  %v265_v39 = vsel %vm202_vm0, %v246_v24, 0.0  ;;  %v220_v40 = vsel %vm202_vm0, %v195_v36, 0.0  ;;  %v249_v44 = vmul.f32 %v193_v22, %v193_v22  ;;  %p545_p2 = pneg %p544_p1 }
  0x26   : > { %v211_v19 = vadd.f32 %v210_v11, %v209_v13  ;;  %v267_v45 = vsel %vm202_vm0, %v247_v32, 0.0  ;;  %v222_v46 = vsel %vm202_vm0, %v196_v42, 0.0  ;;  %v250_v50 = vmul.f32 %v194_v30, %v194_v30 }
  0x27   : > { %v264_v41 = vadd.f32 %v263_v33, %v262_v35  ;;  %v269_v51 = vsel %vm202_vm0, %v248_v38, 0.0  ;;  %v224_v52 = vsel %vm202_vm0, %v197_v48, 0.0  ;;  %v251_v56 = vmul.f32 %v195_v36, %v195_v36  ;;  %p550_p7 = pnand %p549_p6, %p545_p2 }
  0x28   : > { %v213_v23 = vadd.f32 %v212_v16, %v211_v19  ;;  %v271_v57 = vsel %vm202_vm0, %v249_v44, 0.0  ;;  %v226_v58 = vsel %vm202_vm0, %v198_v54, 0.0  ;;  %v252_v62 = vmul.f32 %v196_v42, %v196_v42 }
  0x29   : > { %v266_v47 = vadd.f32 %v265_v39, %v264_v41  ;;  %v273_v63 = vsel %vm202_vm0, %v250_v50, 0.0  ;;  %v228_v0 = vsel %vm202_vm0, %v199_v60, 0.0  ;;  %v253_v4 = vmul.f32 %v197_v48, %v197_v48 }
  0x2a   : > { %v215_v31 = vadd.f32 %v214_v21, %v213_v23  ;;  %v275_v5 = vsel %vm202_vm0, %v251_v56, 0.0  ;;  %v230_v6 = vsel %vm202_vm0, %v200_v2, 0.0  ;;  %v254_v10 = vmul.f32 %v198_v54, %v198_v54 }
  0x2b   : > { %v268_v53 = vadd.f32 %v267_v45, %v266_v47  ;;  %v277_v11 = vsel %vm202_vm0, %v252_v62, 0.0  ;;  %v232_v12 = vsel %vm202_vm0, %v201_v8, 0.0  ;;  %v255_v15 = vmul.f32 %v199_v60, %v199_v60 }
  0x2c   : > { %v217_v37 = vadd.f32 %v216_v27, %v215_v31  ;;  %v279_v16 = vsel %vm202_vm0, %v253_v4, 0.0  ;;  %v256_v19 = vmul.f32 %v200_v2, %v200_v2  ;;  %v281_v20 = vsel %vm202_vm0, %v254_v10, 0.0 }
  0x2d   : > { %v270_v59 = vadd.f32 %v269_v51, %v268_v53  ;;  %v257_v23 = vmul.f32 %v201_v8, %v201_v8  ;;  %v283_v24 = vsel %vm202_vm0, %v255_v15, 0.0 }
  0x2e   : > { %v219_v43 = vadd.f32 %v218_v34, %v217_v37  ;;  %v285_v27 = vsel %vm202_vm0, %v256_v19, 0.0 }
  0x2f   : > { %v272_v1 = vadd.f32 %v271_v57, %v270_v59  ;;  %v287_v30 = vsel %vm202_vm0, %v257_v23, 0.0 }
  0x30   : > { %v221_v49 = vadd.f32 %v220_v40, %v219_v43 }
  0x31   : > { %v274_v7 = vadd.f32 %v273_v63, %v272_v1 }
  0x32   : > { %v223_v55 = vadd.f32 %v222_v46, %v221_v49 }
  0x33   : > { %v276_v13 = vadd.f32 %v275_v5, %v274_v7 }
  0x34   : > { %v225_v61 = vadd.f32 %v224_v52, %v223_v55 }
  0x35   : > { %v278_v17 = vadd.f32 %v277_v11, %v276_v13 }
  0x36   : > { %v227_v3 = vadd.f32 %v226_v58, %v225_v61 }
  0x37   : > { %v280_v21 = vadd.f32 %v279_v16, %v278_v17 }
  0x38   : > { %v229_v9 = vadd.f32 %v228_v0, %v227_v3 }
  0x39   : > { %v282_v25 = vadd.f32 %v281_v20, %v280_v21 }
  0x3a   : > { %v231_v14 = vadd.f32 %v230_v6, %v229_v9 }
  0x3b   : > { %v284_v28 = vadd.f32 %v283_v24, %v282_v25 }
  0x3c   : > { %v233_v18 = vadd.f32 %v232_v12, %v231_v14 }
  0x3d   : > { %v286_v31 = vadd.f32 %v285_v27, %v284_v28 }
  0x3e   : > { %v234_v22 = vrot.slane %v233_v18, 4 }
  0x3f   : > { %v288_v33 = vadd.f32 %v287_v30, %v286_v31 }
  0x40   : > { %v235_v26 = vadd.f32 %v234_v22, %v233_v18 }
  0x41   : > { %v289_v35 = vrot.slane %v288_v33, 4 }
  0x42   : > { %v236_v29 = vrot.slane %v235_v26, 2 }
  0x43   : > { %v290_v37 = vadd.f32 %v289_v35, %v288_v33 }
  0x44   : > { %v237_v32 = vadd.f32 %v236_v29, %v235_v26 }
  0x45   : > { %v291_v38 = vrot.slane %v290_v37, 2 }
  0x46   : > { %v238_v34 = vrot.slane %v237_v32, 1 }
  0x48   : > { %v239_v36 = vadd.f32 %v238_v34, %v237_v32 }
  0x4a   : > { %241 = vst.msk [vmem:[%s168_s26] sm:$0x1] %vm240_vm1, %v239_v36 }
  0x4b   : > { %553 = shalt.err (!%p550_p7)
}
  0x4c   : > { %450 = dma.vmem_to_hbm [thread:$0]  (%p720_p3), %s314_s28, 16, %s316_s12, %s297_s4   ;;  %v292_v39 = vadd.f32 %v291_v38, %v290_v37 }
  0x4d   : > { %s174_s21 = scalar_lea.vmem [#allocation4], %s795_s18  ;;  %s330_s26 = sshll.u32 %s326_s3, 4  ;;  %s331_s26 = int_to_ptr.hbm [resolvable:$true] %s330_s26 }
  0x4e   : > { %s328_s25 = sshll.u32 %s174_s21, 4  ;;  %v293_v40 = vrot.slane %v292_v39, 1  ;;  %s301_s29 = scalar_lea.sflag [#allocation5], %s795_s18  ;;  %s329_s25 = int_to_ptr.vmem [resolvable:$true] %s328_s25 }
  0x4f   : > { %s568_s30 = sshra.s32 %s331_s26, 4  ;;  %s574_s12 = scalar_lea.hbm %s867_s2, 4  ;;  %s569_s30 = int_to_ptr.hbm [resolvable:$true] %s568_s30 }
  0x50   : > { %v294_v41 = vadd.f32 %v293_v40, %v292_v39  ;;  %s570_s5 = scalar_lea.hbm %s569_s30, 1  ;;  %p575_p12 = scmp.lt.s32.totalorder %s569_s30, %s867_s2 }
  0x51   : > { %p571_p9 = scmp.ne.s32.totalorder %s569_s30, %s570_s5  ;;  %p576_p13 = scmp.lt.s32.totalorder %s574_s12, %s570_s5 }
  0x52   : > { %295 = vst.msk [vmem:[%s174_s21] sm:$0x1] %vm240_vm1, %v294_v41 }
  0x53   : > { %p572_p10 = pnand %p571_p9, %p720_p3  ;;  %p577_p0 = por %p576_p13, %p575_p12 }
  0x55   : > { %p573_p11 = pneg %p572_p10 }
  0x57   : > { %p578_p1 = pnand %p577_p0, %p573_p11 }
  0x59   : > { %581 = shalt.err (!%p578_p1)
}
  0x5a   : > { %451 = dma.vmem_to_hbm [thread:$0]  (%p720_p3), %s329_s25, 16, %s331_s26, %s301_s29  }
  0x5b PF: > { %p461_p2 = scmp.ge.s32.totalorder %s652_s16, 2  ;;  %s342_s18 = sand.u32 1, %s624_s9  }
  0x5c   : > { %s343_s7 = scalar_lea.sflag [#allocation3], %s342_s18 }
  0x5d   : > { %p455_p4 = pnand %p461_p2, %p729_p8 }
  0x5f   : > { %p456_p5 = pneg %p455_p4 }
  0x61   : > { %615 = dma.done.wait (%p456_p5), %s343_s7, 16  }
  0x62   : > { %617 = vsyncadd (%p456_p5), %s343_s7, 4294967280  ;;  %s352_s8 = scalar_lea.sflag [#allocation5], %s342_s18 }
  0x63   : > { %619 = dma.done.wait (%p456_p5), %s352_s8, 16  }
  0x64   : > { %621 = vsyncadd (%p456_p5), %s352_s8, 4294967280  ;;  %s19_s16 = sadd.s32 1, %s652_s16   ;;  %s870_s9 = smov %s628_s10 }
  0x65   : > { %p16_p6 = scmp.ge.s32.totalorder %s19_s16, 6   ;;  %s871_s10 = smov %s632_s11 }
  0x66   : > { %s872_s11 = smov %s738_s27  ;;  %s873_s12 = smov %s644_s14 }
  0x67   : > { %s874_s13 = smov %s648_s15  ;;  %s875_s14 = smov %s878_s19 }
  0x68   : > { %s876_s15 = smov %s882_s20  ;;  %18 = sbr.rel (!%p16_p6) target bundleno = 7 (0x7), region = 76 }
  0x6d   :  { %357 = vsyncpa [#allocation3], 1 }
  0x6e   :  { %359 = vsyncpa [#allocation3 + $0x1], 1 }
  0x6f   :  { %360 = vsyncpa [#allocation5], 1 }
  0x70   :  { %362 = vsyncpa [#allocation5 + $0x1], 1 }

</bundles_post_ra>
